<compile_context>
chip_gen: v6e
topology: v6e:2x2x1
jax: 0.10.0
libtpu: 0.0.40
codegen_flags: <defaults>
</compile_context>

<pallas_src>
import jax
import jax.numpy as jnp
from jax import lax
from jax.experimental import pallas as pl
from jax.experimental.pallas import tpu as pltpu


def _projection_kernel(e1_ref, w1_ref, b1_ref, e2_ref, w2_ref, b2_ref,
                       m1_ref, m2_ref):
    # Weights are pre-transposed and alpha-scaled in the wrapper:
    #   M = tanh(E @ W' + b')   with W' = alpha * W.T, b' = alpha * b.
    m1 = jnp.tanh(
        jnp.dot(e1_ref[...], w1_ref[...], preferred_element_type=jnp.float32)
        + b1_ref[...])
    m2 = jnp.tanh(
        jnp.dot(e2_ref[...], w2_ref[...], preferred_element_type=jnp.float32)
        + b2_ref[...])
    m1_ref[...] = m1.astype(m1_ref.dtype)
    m2_ref[...] = m2.astype(m2_ref.dtype)


# Contract the last dim of both operands: X @ Y.T without materializing Y.T.
_CONTRACT_LAST = (((1,), (1,)), ((), ()))


def _adjacency_uni_kernel(m1i_ref, m2j_ref, m2i_ref, m1j_ref, a_ref):
    # A[i, j] = relu(M1_i @ M2_j^T - M2_i @ M1_j^T), f32 MXU accumulation.
    s = lax.dot_general(m1i_ref[...], m2j_ref[...], _CONTRACT_LAST,
                        preferred_element_type=jnp.float32)
    t = lax.dot_general(m2i_ref[...], m1j_ref[...], _CONTRACT_LAST,
                        preferred_element_type=jnp.float32)
    a = jnp.maximum(s - t, 0.0)

    i = pl.program_id(0)
    j = pl.program_id(1)

    @pl.when(i != j)
    def _():
        a_ref[...] = a

    @pl.when(i == j)
    def _():
        # Explicit fill_diagonal_(0): guaranteed-exact zeros on the main diagonal.
        rows = lax.broadcasted_iota(jnp.int32, a.shape, 0)
        cols = lax.broadcasted_iota(jnp.int32, a.shape, 1)
        a_ref[...] = jnp.where(rows == cols, 0.0, a)


def double_embedding_forward(e1, e2, w1, b1, w2, b2, alpha=3.0, *,
                             tile=128, matmul_dtype=jnp.bfloat16):
    """DoubleEmbedding.forward semantics (graph_type='uni', warmup branch).

    Returns (edge_indices, edge_attr, A).
    """
    n, d = e1.shape
    n_pad = ((n + tile - 1) // tile) * tile
    n_tiles = n_pad // tile

    f32 = jnp.float32
    e1p = jnp.pad(e1.astype(f32), ((0, n_pad - n), (0, 0)))
    e2p = jnp.pad(e2.astype(f32), ((0, n_pad - n), (0, 0)))
    # Fold alpha into the linear parameters; pre-transpose so the kernel does a
    # plain E @ W' (no in-kernel transpose, no per-tile alpha multiply).
    w1t = (alpha * w1.astype(f32)).T
    w2t = (alpha * w2.astype(f32)).T
    b1s = (alpha * b1.astype(f32)).reshape(1, d)
    b2s = (alpha * b2.astype(f32)).reshape(1, d)

    # ---- Stage 1: M1/M2 projections (tiny; grid over node-row tiles). ----
    m1, m2 = pl.pallas_call(
        _projection_kernel,
        out_shape=(jax.ShapeDtypeStruct((n_pad, d), matmul_dtype),
                   jax.ShapeDtypeStruct((n_pad, d), matmul_dtype)),
        grid=(n_tiles,),
        in_specs=[
            pl.BlockSpec((tile, d), lambda i: (i, 0)),   # E1 row tile
            pl.BlockSpec((d, d), lambda i: (0, 0)),      # W1' (resident)
            pl.BlockSpec((1, d), lambda i: (0, 0)),      # b1'
            pl.BlockSpec((tile, d), lambda i: (i, 0)),   # E2 row tile
            pl.BlockSpec((d, d), lambda i: (0, 0)),      # W2'
            pl.BlockSpec((1, d), lambda i: (0, 0)),      # b2'
        ],
        out_specs=(pl.BlockSpec((tile, d), lambda i: (i, 0)),
                   pl.BlockSpec((tile, d), lambda i: (i, 0))),
        compiler_params=pltpu.CompilerParams(
            dimension_semantics=("parallel",)),
    )(e1p, w1t, b1s, e2p, w2t, b2s)

    # ---- Stage 2: tiled (n_pad, n_pad) adjacency, lane-dense output tiles. ----
    a_pad = pl.pallas_call(
        _adjacency_uni_kernel,
        out_shape=jax.ShapeDtypeStruct((n_pad, n_pad), jnp.float32),
        grid=(n_tiles, n_tiles),
        in_specs=[
            pl.BlockSpec((tile, d), lambda i, j: (i, 0)),   # M1[i]
            pl.BlockSpec((tile, d), lambda i, j: (j, 0)),   # M2[j]
            pl.BlockSpec((tile, d), lambda i, j: (i, 0)),   # M2[i]
            pl.BlockSpec((tile, d), lambda i, j: (j, 0)),   # M1[j]
        ],
        out_specs=pl.BlockSpec((tile, tile), lambda i, j: (i, j)),
        compiler_params=pltpu.CompilerParams(
            dimension_semantics=("parallel", "parallel"),
            vmem_limit_bytes=32 * 1024 * 1024),
    )(m1, m2, m2, m1)

    a = a_pad[:n, :n]

    # Warmup-branch glue: fully-connected edge index list. Matches
    # torch.stack([edge_indices.T.flatten(), edge_indices.flatten()], dim=0)
    # with edge_indices = arange(N).expand(N, N).
    src = jnp.repeat(jnp.arange(n, dtype=jnp.int32), n)
    dst = jnp.tile(jnp.arange(n, dtype=jnp.int32), n)
    edge_indices = jnp.stack([src, dst], axis=0)
    edge_attr = a.reshape(-1)
    # TODO(synk): post-warmup top-k sparsification / boolean-mask gather branch
    # (data-dependent ragged output) and graph_type 'bi'/'sym' are not implemented.
    return edge_indices, edge_attr, a


if __name__ == "__main__":
    num_nodes = 16
    embed_dim = 32
    alpha = 3.0

    key = jax.random.PRNGKey(0)
    k1, k2, k3, k4, k5, k6 = jax.random.split(key, 6)

    # Deterministic synthetic parameters (shapes follow the module's __init__).
    # kaiming_uniform(a=sqrt(5)) bound ~= sqrt(1 / fan_in).
    bound = (1.0 / embed_dim) ** 0.5
    e1 = jax.random.uniform(k1, (num_nodes, embed_dim), jnp.float32, -bound, bound)
    e2 = jax.random.uniform(k2, (num_nodes, embed_dim), jnp.float32, -bound, bound)
    w1 = jax.random.uniform(k3, (embed_dim, embed_dim), jnp.float32, -bound, bound)
    b1 = jax.random.uniform(k4, (embed_dim,), jnp.float32, -bound, bound)
    w2 = jax.random.uniform(k5, (embed_dim, embed_dim), jnp.float32, -bound, bound)
    b2 = jax.random.uniform(k6, (embed_dim,), jnp.float32, -bound, bound)

    edge_indices, edge_attr, A = double_embedding_forward(
        e1, e2, w1, b1, w2, b2, alpha)
    jax.block_until_ready((edge_indices, edge_attr, A))

    # Plain-JAX f32 reference (kernel feeds the MXU bf16 M1/M2 -> loose tolerance).
    m1_ref = jnp.tanh(alpha * (e1 @ w1.T + b1))
    m2_ref = jnp.tanh(alpha * (e2 @ w2.T + b2))
    a_ref = jnp.maximum(m1_ref @ m2_ref.T - m2_ref @ m1_ref.T, 0.0)
    a_ref = a_ref * (1.0 - jnp.eye(num_nodes, dtype=jnp.float32))

    assert A.shape == (num_nodes, num_nodes)
    assert edge_indices.shape == (2, num_nodes * num_nodes)
    assert edge_attr.shape == (num_nodes * num_nodes,)
    assert bool(jnp.all(A >= 0.0)), "relu violated"
    assert bool(jnp.all(jnp.diagonal(A) == 0.0)), "diagonal not zero"
    assert jnp.allclose(A, a_ref, atol=5e-2, rtol=5e-2), "mismatch vs reference"

    print("KERNEL_OK")
</pallas_src>

<mosaic_0001>
module attributes {stable_mosaic.version = 11 : i64} {
  func.func @_projection_kernel(%arg0: i32, %arg1: memref<128x32xf32, #tpu.memory_space<vmem>>, %arg2: memref<32x32xf32, #tpu.memory_space<vmem>>, %arg3: memref<1x32xf32, #tpu.memory_space<vmem>>, %arg4: memref<128x32xf32, #tpu.memory_space<vmem>>, %arg5: memref<32x32xf32, #tpu.memory_space<vmem>>, %arg6: memref<1x32xf32, #tpu.memory_space<vmem>>, %arg7: memref<128x32xbf16, #tpu.memory_space<vmem>>, %arg8: memref<128x32xbf16, #tpu.memory_space<vmem>>) attributes {dimension_semantics = [#tpu.dimension_semantics<parallel>], iteration_bounds = array<i64: 1>, scalar_prefetch = 0 : i64, scratch_operands = 0 : i64, tpu.core_type = #tpu.core_type<tc>, window_params = [{transform_indices = @transform_0, window_bounds = array<i64: 128, 32>}, {pipeline_mode = #tpu.pipeline_mode<synchronous>, transform_indices = @transform_1, window_bounds = array<i64: 32, 32>}, {pipeline_mode = #tpu.pipeline_mode<synchronous>, transform_indices = @transform_2, window_bounds = array<i64: 1, 32>}, {transform_indices = @transform_3, window_bounds = array<i64: 128, 32>}, {pipeline_mode = #tpu.pipeline_mode<synchronous>, transform_indices = @transform_4, window_bounds = array<i64: 32, 32>}, {pipeline_mode = #tpu.pipeline_mode<synchronous>, transform_indices = @transform_5, window_bounds = array<i64: 1, 32>}, {transform_indices = @transform_6, window_bounds = array<i64: 128, 32>}, {transform_indices = @transform_7, window_bounds = array<i64: 128, 32>}]} {
    %c0 = arith.constant 0 : index
    %c0_0 = arith.constant 0 : index
    %0 = vector.load %arg1[%c0, %c0_0] : memref<128x32xf32, #tpu.memory_space<vmem>>, vector<128x32xf32>
    %c0_1 = arith.constant 0 : index
    %c0_2 = arith.constant 0 : index
    %1 = vector.load %arg2[%c0_1, %c0_2] : memref<32x32xf32, #tpu.memory_space<vmem>>, vector<32x32xf32>
    %cst = arith.constant dense<0.000000e+00> : vector<128x32xf32>
    %2 = tpu.matmul %0, %1, %cst {dimension_numbers = #tpu.dot_dimension_numbers<[1], [0], [0], [1], [0, 0, 1, 1], [], []>} : vector<128x32xf32>, vector<32x32xf32>, vector<128x32xf32> -> vector<128x32xf32>
    %c0_3 = arith.constant 0 : index
    %c0_4 = arith.constant 0 : index
    %3 = vector.load %arg3[%c0_3, %c0_4] : memref<1x32xf32, #tpu.memory_space<vmem>>, vector<1x32xf32>
    %4 = vector.broadcast %3 : vector<1x32xf32> to vector<128x32xf32>
    %5 = arith.addf %2, %4 : vector<128x32xf32>
    %6 = math.tanh %5 : vector<128x32xf32>
    %c0_5 = arith.constant 0 : index
    %c0_6 = arith.constant 0 : index
    %7 = vector.load %arg4[%c0_5, %c0_6] : memref<128x32xf32, #tpu.memory_space<vmem>>, vector<128x32xf32>
    %c0_7 = arith.constant 0 : index
    %c0_8 = arith.constant 0 : index
    %8 = vector.load %arg5[%c0_7, %c0_8] : memref<32x32xf32, #tpu.memory_space<vmem>>, vector<32x32xf32>
    %cst_9 = arith.constant dense<0.000000e+00> : vector<128x32xf32>
    %9 = tpu.matmul %7, %8, %cst_9 {dimension_numbers = #tpu.dot_dimension_numbers<[1], [0], [0], [1], [0, 0, 1, 1], [], []>} : vector<128x32xf32>, vector<32x32xf32>, vector<128x32xf32> -> vector<128x32xf32>
    %c0_10 = arith.constant 0 : index
    %c0_11 = arith.constant 0 : index
    %10 = vector.load %arg6[%c0_10, %c0_11] : memref<1x32xf32, #tpu.memory_space<vmem>>, vector<1x32xf32>
    %11 = vector.broadcast %10 : vector<1x32xf32> to vector<128x32xf32>
    %12 = arith.addf %9, %11 : vector<128x32xf32>
    %13 = math.tanh %12 : vector<128x32xf32>
    %14 = arith.truncf %6 : vector<128x32xf32> to vector<128x32xbf16>
    %c0_12 = arith.constant 0 : index
    %c0_13 = arith.constant 0 : index
    %15 = vector.load %arg7[%c0_12, %c0_13] : memref<128x32xbf16, #tpu.memory_space<vmem>>, vector<128x32xbf16>
    tpu.vector_store %arg7[%c0_12, %c0_13], %14 {strides = array<i32>} : memref<128x32xbf16, #tpu.memory_space<vmem>>, vector<128x32xbf16>,
    %16 = arith.truncf %13 : vector<128x32xf32> to vector<128x32xbf16>
    %c0_14 = arith.constant 0 : index
    %c0_15 = arith.constant 0 : index
    %17 = vector.load %arg8[%c0_14, %c0_15] : memref<128x32xbf16, #tpu.memory_space<vmem>>, vector<128x32xbf16>
    tpu.vector_store %arg8[%c0_14, %c0_15], %16 {strides = array<i32>} : memref<128x32xbf16, #tpu.memory_space<vmem>>, vector<128x32xbf16>,
    return
  }
  func.func @transform_0(%arg0: i32) -> (i32, i32) {
    %c0_i32 = arith.constant 0 : i32
    %c0_i32_0 = arith.constant 0 : i32
    return %arg0, %c0_i32 : i32, i32
  }
  func.func @transform_1(%arg0: i32) -> (i32, i32) {
    %c0_i32 = arith.constant 0 : i32
    %c0_i32_0 = arith.constant 0 : i32
    %c0_i32_1 = arith.constant 0 : i32
    return %c0_i32, %c0_i32_0 : i32, i32
  }
  func.func @transform_2(%arg0: i32) -> (i32, i32) {
    %c0_i32 = arith.constant 0 : i32
    %c0_i32_0 = arith.constant 0 : i32
    %c0_i32_1 = arith.constant 0 : i32
    return %c0_i32, %c0_i32_0 : i32, i32
  }
  func.func @transform_3(%arg0: i32) -> (i32, i32) {
    %c0_i32 = arith.constant 0 : i32
    %c0_i32_0 = arith.constant 0 : i32
    return %arg0, %c0_i32 : i32, i32
  }
  func.func @transform_4(%arg0: i32) -> (i32, i32) {
    %c0_i32 = arith.constant 0 : i32
    %c0_i32_0 = arith.constant 0 : i32
    %c0_i32_1 = arith.constant 0 : i32
    return %c0_i32, %c0_i32_0 : i32, i32
  }
  func.func @transform_5(%arg0: i32) -> (i32, i32) {
    %c0_i32 = arith.constant 0 : i32
    %c0_i32_0 = arith.constant 0 : i32
    %c0_i32_1 = arith.constant 0 : i32
    return %c0_i32, %c0_i32_0 : i32, i32
  }
  func.func @transform_6(%arg0: i32) -> (i32, i32) {
    %c0_i32 = arith.constant 0 : i32
    %c0_i32_0 = arith.constant 0 : i32
    return %arg0, %c0_i32 : i32, i32
  }
  func.func @transform_7(%arg0: i32) -> (i32, i32) {
    %c0_i32 = arith.constant 0 : i32
    %c0_i32_0 = arith.constant 0 : i32
    return %arg0, %c0_i32 : i32, i32
  }
}

</mosaic_0001>

<bundles_post_ra>
// kernel: tpu_custom_call.1
= control target key start
LH: loop header
LB: loop body
LE: loop exit
PB: predicated region body
PF: predicated region fallthrough
CT: control target
= control target key end

     0   :  { %vm52_vm0 = vcmask 261120   ;;  %vm562_vm1 = vcmask 257024   ;;  %s1295_s1 = inlined_call_operand.vmem [shape: f32[32,32], index: 1, kind: input, shape index: {}]   ;;  %s1296_s4 = inlined_call_operand.vmem [shape: f32[32,32], index: 4, kind: input, shape index: {}]   ;;  %s1297_s0 = inlined_call_operand.vmem [shape: f32[128,32], index: 0, kind: input, shape index: {}]   ;;  %s1298_s3 = inlined_call_operand.vmem [shape: f32[128,32], index: 3, kind: input, shape index: {}]   ;;  %s1299_s2 = inlined_call_operand.vmem [shape: f32[1,32], index: 2, kind: input, shape index: {}]   ;;  %s1300_s5 = inlined_call_operand.vmem [shape: f32[1,32], index: 5, kind: input, shape index: {}]   ;;  %s1301_s6 = inlined_call_operand.vmem [shape: bf16[128,32], index: 6, kind: output, shape index: {0}]   ;;  %s1302_s7 = inlined_call_operand.vmem [shape: bf16[128,32], index: 7, kind: output, shape index: {1}]  }
   0x1   :  { %v44_v0 = vld [vmem:[%s1295_s1 + $0x18] sm:$0xff]  ;;  %v43_v2 = vld [vmem:[%s1295_s1 + $0x10] sm:$0xff]  ;;  %v42_v4 = vld [vmem:[%s1295_s1 + $0x8] sm:$0xff] }
   0x2   :  { %v281_v1 = vld [vmem:[%s1296_s4 + $0x18] sm:$0xff]  ;;  %805 = vmatprep.subr.mxu0 %v44_v0  ;;  %v280_v3 = vld [vmem:[%s1296_s4 + $0x10] sm:$0xff]  ;;  %v279_v5 = vld [vmem:[%s1296_s4 + $0x8] sm:$0xff] }
   0x3   :  { %837 = vmatprep.subr.mxu1 %v281_v1  ;;  %806 = vmatpush3.msra.mxu0 %v44_v0  ;;  %v41_v6 = vld [vmem:[%s1295_s1] sm:$0xff]  ;;  %v26_v10 = vld [vmem:[%s1297_s0 + $0x8] sm:$0xff]  ;;  %v27_v12 = vld [vmem:[%s1297_s0 + $0x10] sm:$0xff] }
   0x4   :  { %838 = vmatpush3.msra.mxu1 %v281_v1  ;;  %807 = vmatprep.subr.mxu0 %v43_v2  ;;  %v278_v7 = vld [vmem:[%s1296_s4] sm:$0xff]  ;;  %v263_v11 = vld [vmem:[%s1298_s3 + $0x8] sm:$0xff]  ;;  %v264_v13 = vld [vmem:[%s1298_s3 + $0x10] sm:$0xff] }
   0x5   :  { %839 = vmatprep.subr.mxu1 %v280_v3  ;;  %808 = vmatpush3.msra.mxu0 %v43_v2  ;;  %v25_v8 = vld [vmem:[%s1297_s0] sm:$0xff]  ;;  %v28_v14 = vld [vmem:[%s1297_s0 + $0x18] sm:$0xff]  ;;  %v30_v18 = vld [vmem:[%s1297_s0 + $0x28] sm:$0xff] }
   0x6   :  { %840 = vmatpush3.msra.mxu1 %v280_v3  ;;  %809 = vmatprep.subr.mxu0 %v42_v4  ;;  %v262_v9 = vld [vmem:[%s1298_s3] sm:$0xff]  ;;  %v265_v15 = vld [vmem:[%s1298_s3 + $0x18] sm:$0xff]  ;;  %v267_v19 = vld [vmem:[%s1298_s3 + $0x28] sm:$0xff] }
   0x7   :  { %841 = vmatprep.subr.mxu1 %v279_v5  ;;  %810 = vmatpush3.msra.mxu0 %v42_v4  ;;  %v29_v16 = vld [vmem:[%s1297_s0 + $0x20] sm:$0xff]  ;;  %v31_v20 = vld [vmem:[%s1297_s0 + $0x30] sm:$0xff]  ;;  %v32_v22 = vld [vmem:[%s1297_s0 + $0x38] sm:$0xff] }
   0x8   :  { %842 = vmatpush3.msra.mxu1 %v279_v5  ;;  %811 = vmatprep.subr.mxu0 %v41_v6  ;;  %v266_v17 = vld [vmem:[%s1298_s3 + $0x20] sm:$0xff]  ;;  %v268_v21 = vld [vmem:[%s1298_s3 + $0x30] sm:$0xff]  ;;  %v269_v23 = vld [vmem:[%s1298_s3 + $0x38] sm:$0xff] }
   0x9   :  { %843 = vmatprep.subr.mxu1 %v278_v7  ;;  %812 = vmatpush3.msra.mxu0 %v41_v6  ;;  %v33_v24 = vld [vmem:[%s1297_s0 + $0x40] sm:$0xff]  ;;  %v34_v26 = vld [vmem:[%s1297_s0 + $0x48] sm:$0xff]  ;;  %v35_v28 = vld [vmem:[%s1297_s0 + $0x50] sm:$0xff] }
   0xa   :  { %813 = vmatprep.mubr.msk.f32.mxu0 %vm52_vm0, %v25_v8  ;;  %844 = vmatpush3.msra.mxu1 %v278_v7  ;;  %v270_v25 = vld [vmem:[%s1298_s3 + $0x40] sm:$0xff]  ;;  %v271_v27 = vld [vmem:[%s1298_s3 + $0x48] sm:$0xff]  ;;  %v272_v29 = vld [vmem:[%s1298_s3 + $0x50] sm:$0xff] }
   0xb   :  { %845 = vmatprep.mubr.msk.f32.mxu1 %vm52_vm0, %v262_v9  ;;  %814 = vmatmul.mubr.msk.f32.vlgmr.msra.gmra.mxu0 %vm52_vm0, %v26_v10  ;;  %v36_v30 = vld [vmem:[%s1297_s0 + $0x58] sm:$0xff]  ;;  %v37_v32 = vld [vmem:[%s1297_s0 + $0x60] sm:$0xff]  ;;  %v38_v34 = vld [vmem:[%s1297_s0 + $0x68] sm:$0xff] }
   0xc   :  { %846 = vmatmul.mubr.msk.f32.vlgmr.msra.gmra.mxu1 %vm52_vm0, %v263_v11  ;;  %816 = vmatprep.mubr.msk.f32.mxu0 %vm52_vm0, %v27_v12  ;;  %v273_v31 = vld [vmem:[%s1298_s3 + $0x58] sm:$0xff]  ;;  %v274_v33 = vld [vmem:[%s1298_s3 + $0x60] sm:$0xff]  ;;  %v275_v35 = vld [vmem:[%s1298_s3 + $0x68] sm:$0xff] }
   0xd   :  { %848 = vmatprep.mubr.msk.f32.mxu1 %vm52_vm0, %v264_v13  ;;  %v39_v36 = vld [vmem:[%s1297_s0 + $0x70] sm:$0xff]  ;;  %v40_v38 = vld [vmem:[%s1297_s0 + $0x78] sm:$0xff]  ;;  %v1128_v40 = vld [vmem:[%s1299_s2] ss:$0 sm:$0xff] }
   0xe   :  { %v276_v37 = vld [vmem:[%s1298_s3 + $0x70] sm:$0xff]  ;;  %v277_v39 = vld [vmem:[%s1298_s3 + $0x78] sm:$0xff]  ;;  %v1133_v41 = vld [vmem:[%s1300_s5] ss:$0 sm:$0xff] }
   0xf   :  { %817 = vmatmul.mubr.msk.f32.gmra.mxu0 %vm52_vm0, %v28_v14 }
  0x10   :  { %849 = vmatmul.mubr.msk.f32.gmra.mxu1 %vm52_vm0, %v265_v15  ;;  %819 = vmatprep.mubr.msk.f32.mxu0 %vm52_vm0, %v29_v16 }
  0x11   :  { %851 = vmatprep.mubr.msk.f32.mxu1 %vm52_vm0, %v266_v17 }
  0x13   :  { %820 = vmatmul.mubr.msk.f32.gmra.mxu0 %vm52_vm0, %v30_v18 }
  0x14   :  { %852 = vmatmul.mubr.msk.f32.gmra.mxu1 %vm52_vm0, %v267_v19  ;;  %822 = vmatprep.mubr.msk.f32.mxu0 %vm52_vm0, %v31_v20 }
  0x15   :  { %854 = vmatprep.mubr.msk.f32.mxu1 %vm52_vm0, %v268_v21 }
  0x17   :  { %823 = vmatmul.mubr.msk.f32.gmra.mxu0 %vm52_vm0, %v32_v22 }
  0x18   :  { %855 = vmatmul.mubr.msk.f32.gmra.mxu1 %vm52_vm0, %v269_v23  ;;  %825 = vmatprep.mubr.msk.f32.mxu0 %vm52_vm0, %v33_v24 }
  0x19   :  { %857 = vmatprep.mubr.msk.f32.mxu1 %vm52_vm0, %v270_v25 }
  0x1b   :  { %826 = vmatmul.mubr.msk.f32.gmra.mxu0 %vm52_vm0, %v34_v26 }
  0x1c   :  { %858 = vmatmul.mubr.msk.f32.gmra.mxu1 %vm52_vm0, %v271_v27  ;;  %828 = vmatprep.mubr.msk.f32.mxu0 %vm52_vm0, %v35_v28 }
  0x1d   :  { %860 = vmatprep.mubr.msk.f32.mxu1 %vm52_vm0, %v272_v29 }
  0x1f   :  { %829 = vmatmul.mubr.msk.f32.gmra.mxu0 %vm52_vm0, %v36_v30 }
  0x20   :  { %861 = vmatmul.mubr.msk.f32.gmra.mxu1 %vm52_vm0, %v273_v31  ;;  %831 = vmatprep.mubr.msk.f32.mxu0 %vm52_vm0, %v37_v32 }
  0x21   :  { %863 = vmatprep.mubr.msk.f32.mxu1 %vm52_vm0, %v274_v33 }
  0x23   :  { %832 = vmatmul.mubr.msk.f32.gmra.mxu0 %vm52_vm0, %v38_v34 }
  0x24   :  { %864 = vmatmul.mubr.msk.f32.gmra.mxu1 %vm52_vm0, %v275_v35  ;;  %834 = vmatprep.mubr.msk.f32.mxu0 %vm52_vm0, %v39_v36 }
  0x25   :  { %866 = vmatprep.mubr.msk.f32.mxu1 %vm52_vm0, %v276_v37 }
  0x27   :  { %835 = vmatmul.mubr.msk.f32.gmra.mxu0 %vm52_vm0, %v40_v38 }
  0x28   :  { %867 = vmatmul.mubr.msk.f32.gmra.mxu1 %vm52_vm0, %v277_v39 }
  0xcb   :  { %v815_v42 = vpop.f32.mrf.mxu0 }
  0xcc   :  { %v847_v43 = vpop.f32.mrf.mxu1  ;;  %v173_v44 = vadd.f32 %v815_v42, %v1128_v40 }
  0xcd   :  { %v409_v45 = vadd.f32 %v847_v43, %v1133_v41  ;;  %v167_v46 = vpop.f32.mrf.mxu0 }
  0xce   :  { %v403_v47 = vpop.f32.mrf.mxu1  ;;  %869 = vtanh.f32 %v173_v44  ;;  %v168_v48 = vadd.f32 %v1128_v40, %v167_v46 }
  0xcf   :  { %v404_v49 = vadd.f32 %v1133_v41, %v403_v47  ;;  %871 = vtanh.f32 %v409_v45  ;;  %v818_v50 = vpop.f32.mrf.mxu0 }
  0xd0   :  { %v850_v51 = vpop.f32.mrf.mxu1  ;;  %873 = vtanh.f32 %v168_v48  ;;  %v183_v52 = vadd.f32 %v818_v50, %v1128_v40 }
  0xd1   :  { %v419_v53 = vadd.f32 %v850_v51, %v1133_v41  ;;  %875 = vtanh.f32 %v404_v49  ;;  %v177_v54 = vpop.f32.mrf.mxu0 }
  0xd2   :  { %v413_v55 = vpop.f32.mrf.mxu1  ;;  %877 = vtanh.f32 %v183_v52  ;;  %v178_v56 = vadd.f32 %v1128_v40, %v177_v54 }
  0xd3   :  { %v414_v57 = vadd.f32 %v1133_v41, %v413_v55  ;;  %879 = vtanh.f32 %v419_v53  ;;  %v821_v58 = vpop.f32.mrf.mxu0 }
  0xd4   :  { %v853_v59 = vpop.f32.mrf.mxu1  ;;  %881 = vtanh.f32 %v178_v56  ;;  %v193_v60 = vadd.f32 %v821_v58, %v1128_v40 }
  0xd5   :  { %v429_v61 = vadd.f32 %v853_v59, %v1133_v41  ;;  %883 = vtanh.f32 %v414_v57  ;;  %v187_v62 = vpop.f32.mrf.mxu0 }
  0xd6   :  { %v423_v63 = vpop.f32.mrf.mxu1  ;;  %885 = vtanh.f32 %v193_v60  ;;  %v188_v0 = vadd.f32 %v1128_v40, %v187_v62 }
  0xd7   :  { %v424_v1 = vadd.f32 %v1133_v41, %v423_v63  ;;  %887 = vtanh.f32 %v429_v61  ;;  %v824_v2 = vpop.f32.mrf.mxu0 }
  0xd8   :  { %v856_v3 = vpop.f32.mrf.mxu1  ;;  %889 = vtanh.f32 %v188_v0  ;;  %v203_v4 = vadd.f32 %v824_v2, %v1128_v40 }
  0xd9   :  { %v439_v5 = vadd.f32 %v856_v3, %v1133_v41  ;;  %891 = vtanh.f32 %v424_v1  ;;  %v197_v6 = vpop.f32.mrf.mxu0 }
  0xda   :  { %v433_v7 = vpop.f32.mrf.mxu1  ;;  %893 = vtanh.f32 %v203_v4  ;;  %v198_v8 = vadd.f32 %v1128_v40, %v197_v6 }
  0xdb   :  { %v434_v9 = vadd.f32 %v1133_v41, %v433_v7  ;;  %v870_v10 = vpop.eup %869  ;;  %895 = vtanh.f32 %v439_v5  ;;  %v827_v11 = vpop.f32.mrf.mxu0 }
  0xdc   :  { %v859_v12 = vpop.f32.mrf.mxu1  ;;  %v872_v13 = vpop.eup %871  ;;  %v734_v14 = vpack.c.bf16 %v870_v10, %v870_v10  ;;  %897 = vtanh.f32 %v198_v8  ;;  %v213_v15 = vadd.f32 %v827_v11, %v1128_v40 }
  0xdd   :  { %v449_v16 = vadd.f32 %v859_v12, %v1133_v41  ;;  %v874_v17 = vpop.eup %873  ;;  %v750_v18 = vpack.c.bf16 %v872_v13, %v872_v13  ;;  %899 = vtanh.f32 %v434_v9  ;;  %v207_v19 = vpop.f32.mrf.mxu0 }
  0xde   :  { %v443_v20 = vpop.f32.mrf.mxu1  ;;  %v876_v21 = vpop.eup %875  ;;  %564 = vst.msk [vmem:[%s1301_s6 + $0x4] sm:$0xf] %vm562_vm1, %v734_v14  ;;  %v733_v22 = vpack.c.bf16 %v874_v17, %v874_v17  ;;  %901 = vtanh.f32 %v213_v15  ;;  %v208_v23 = vadd.f32 %v1128_v40, %v207_v19 }
  0xdf   :  { %v444_v24 = vadd.f32 %v1133_v41, %v443_v20  ;;  %v878_v25 = vpop.eup %877  ;;  %644 = vst.msk [vmem:[%s1302_s7 + $0x4] sm:$0xf] %vm562_vm1, %v750_v18  ;;  %v749_v26 = vpack.c.bf16 %v876_v21, %v876_v21  ;;  %903 = vtanh.f32 %v449_v16  ;;  %v830_v27 = vpop.f32.mrf.mxu0 }
  0xe0   :  { %v862_v28 = vpop.f32.mrf.mxu1  ;;  %v880_v29 = vpop.eup %879  ;;  %563 = vst.msk [vmem:[%s1301_s6] sm:$0xf] %vm562_vm1, %v733_v22  ;;  %v736_v30 = vpack.c.bf16 %v878_v25, %v878_v25  ;;  %905 = vtanh.f32 %v208_v23  ;;  %v223_v31 = vadd.f32 %v830_v27, %v1128_v40 }
  0xe1   :  { %v459_v32 = vadd.f32 %v862_v28, %v1133_v41  ;;  %v882_v33 = vpop.eup %881  ;;  %643 = vst.msk [vmem:[%s1302_s7] sm:$0xf] %vm562_vm1, %v749_v26  ;;  %v752_v34 = vpack.c.bf16 %v880_v29, %v880_v29  ;;  %907 = vtanh.f32 %v444_v24  ;;  %v217_v35 = vpop.f32.mrf.mxu0 }
  0xe2   :  { %v453_v36 = vpop.f32.mrf.mxu1  ;;  %v884_v37 = vpop.eup %883  ;;  %566 = vst.msk [vmem:[%s1301_s6 + $0xc] sm:$0xf] %vm562_vm1, %v736_v30  ;;  %v735_v38 = vpack.c.bf16 %v882_v33, %v882_v33  ;;  %909 = vtanh.f32 %v223_v31  ;;  %v218_v39 = vadd.f32 %v1128_v40, %v217_v35 }
  0xe3   :  { %v454_v42 = vadd.f32 %v1133_v41, %v453_v36  ;;  %v886_v43 = vpop.eup %885  ;;  %646 = vst.msk [vmem:[%s1302_s7 + $0xc] sm:$0xf] %vm562_vm1, %v752_v34  ;;  %v751_v44 = vpack.c.bf16 %v884_v37, %v884_v37  ;;  %911 = vtanh.f32 %v459_v32  ;;  %v833_v45 = vpop.f32.mrf.mxu0 }
  0xe4   :  { %v865_v46 = vpop.f32.mrf.mxu1  ;;  %v888_v47 = vpop.eup %887  ;;  %565 = vst.msk [vmem:[%s1301_s6 + $0x8] sm:$0xf] %vm562_vm1, %v735_v38  ;;  %v738_v48 = vpack.c.bf16 %v886_v43, %v886_v43  ;;  %913 = vtanh.f32 %v218_v39  ;;  %v233_v49 = vadd.f32 %v833_v45, %v1128_v40 }
  0xe5   :  { %v469_v50 = vadd.f32 %v865_v46, %v1133_v41  ;;  %v890_v51 = vpop.eup %889  ;;  %645 = vst.msk [vmem:[%s1302_s7 + $0x8] sm:$0xf] %vm562_vm1, %v751_v44  ;;  %v754_v52 = vpack.c.bf16 %v888_v47, %v888_v47  ;;  %915 = vtanh.f32 %v454_v42  ;;  %v227_v53 = vpop.f32.mrf.mxu0 }
  0xe6   :  { %v463_v54 = vpop.f32.mrf.mxu1  ;;  %v892_v55 = vpop.eup %891  ;;  %568 = vst.msk [vmem:[%s1301_s6 + $0x14] sm:$0xf] %vm562_vm1, %v738_v48  ;;  %v737_v56 = vpack.c.bf16 %v890_v51, %v890_v51  ;;  %917 = vtanh.f32 %v233_v49  ;;  %v228_v57 = vadd.f32 %v1128_v40, %v227_v53 }
  0xe7   :  { %v464_v58 = vadd.f32 %v1133_v41, %v463_v54  ;;  %v894_v59 = vpop.eup %893  ;;  %648 = vst.msk [vmem:[%s1302_s7 + $0x14] sm:$0xf] %vm562_vm1, %v754_v52  ;;  %v753_v60 = vpack.c.bf16 %v892_v55, %v892_v55  ;;  %919 = vtanh.f32 %v469_v50  ;;  %v836_v61 = vpop.f32.mrf.mxu0 }
  0xe8   :  { %v868_v62 = vpop.f32.mrf.mxu1  ;;  %v896_v63 = vpop.eup %895  ;;  %567 = vst.msk [vmem:[%s1301_s6 + $0x10] sm:$0xf] %vm562_vm1, %v737_v56  ;;  %v740_v0 = vpack.c.bf16 %v894_v59, %v894_v59  ;;  %921 = vtanh.f32 %v228_v57  ;;  %v243_v1 = vadd.f32 %v836_v61, %v1128_v40 }
  0xe9   :  { %v479_v2 = vadd.f32 %v868_v62, %v1133_v41  ;;  %v898_v3 = vpop.eup %897  ;;  %647 = vst.msk [vmem:[%s1302_s7 + $0x10] sm:$0xf] %vm562_vm1, %v753_v60  ;;  %v756_v4 = vpack.c.bf16 %v896_v63, %v896_v63  ;;  %923 = vtanh.f32 %v464_v58  ;;  %v237_v5 = vpop.f32.mrf.mxu0 }
  0xea   :  { %v473_v6 = vpop.f32.mrf.mxu1  ;;  %v900_v7 = vpop.eup %899  ;;  %570 = vst.msk [vmem:[%s1301_s6 + $0x1c] sm:$0xf] %vm562_vm1, %v740_v0  ;;  %v739_v8 = vpack.c.bf16 %v898_v3, %v898_v3  ;;  %925 = vtanh.f32 %v243_v1  ;;  %v238_v9 = vadd.f32 %v1128_v40, %v237_v5 }
  0xeb   :  { %v474_v10 = vadd.f32 %v1133_v41, %v473_v6  ;;  %v902_v11 = vpop.eup %901  ;;  %650 = vst.msk [vmem:[%s1302_s7 + $0x1c] sm:$0xf] %vm562_vm1, %v756_v4  ;;  %v755_v12 = vpack.c.bf16 %v900_v7, %v900_v7  ;;  %927 = vtanh.f32 %v479_v2 }
  0xec   :  { %v904_v13 = vpop.eup %903  ;;  %569 = vst.msk [vmem:[%s1301_s6 + $0x18] sm:$0xf] %vm562_vm1, %v739_v8  ;;  %v742_v14 = vpack.c.bf16 %v902_v11, %v902_v11  ;;  %929 = vtanh.f32 %v238_v9 }
  0xed   :  { %v906_v15 = vpop.eup %905  ;;  %649 = vst.msk [vmem:[%s1302_s7 + $0x18] sm:$0xf] %vm562_vm1, %v755_v12  ;;  %v758_v40 = vpack.c.bf16 %v904_v13, %v904_v13  ;;  %931 = vtanh.f32 %v474_v10 }
  0xee   :  { %v908_v41 = vpop.eup %907  ;;  %572 = vst.msk [vmem:[%s1301_s6 + $0x24] sm:$0xf] %vm562_vm1, %v742_v14  ;;  %v741_v16 = vpack.c.bf16 %v906_v15, %v906_v15 }
  0xef   :  { %v910_v17 = vpop.eup %909  ;;  %652 = vst.msk [vmem:[%s1302_s7 + $0x24] sm:$0xf] %vm562_vm1, %v758_v40  ;;  %v757_v18 = vpack.c.bf16 %v908_v41, %v908_v41 }
  0xf0   :  { %v912_v19 = vpop.eup %911  ;;  %571 = vst.msk [vmem:[%s1301_s6 + $0x20] sm:$0xf] %vm562_vm1, %v741_v16  ;;  %v744_v20 = vpack.c.bf16 %v910_v17, %v910_v17 }
  0xf1   :  { %v914_v21 = vpop.eup %913  ;;  %651 = vst.msk [vmem:[%s1302_s7 + $0x20] sm:$0xf] %vm562_vm1, %v757_v18  ;;  %v760_v22 = vpack.c.bf16 %v912_v19, %v912_v19 }
  0xf2   :  { %v916_v23 = vpop.eup %915  ;;  %574 = vst.msk [vmem:[%s1301_s6 + $0x2c] sm:$0xf] %vm562_vm1, %v744_v20  ;;  %v743_v24 = vpack.c.bf16 %v914_v21, %v914_v21 }
  0xf3   :  { %v918_v25 = vpop.eup %917  ;;  %654 = vst.msk [vmem:[%s1302_s7 + $0x2c] sm:$0xf] %vm562_vm1, %v760_v22  ;;  %v759_v26 = vpack.c.bf16 %v916_v23, %v916_v23 }
  0xf4   :  { %v920_v27 = vpop.eup %919  ;;  %573 = vst.msk [vmem:[%s1301_s6 + $0x28] sm:$0xf] %vm562_vm1, %v743_v24  ;;  %v746_v28 = vpack.c.bf16 %v918_v25, %v918_v25 }
  0xf5   :  { %v922_v29 = vpop.eup %921  ;;  %653 = vst.msk [vmem:[%s1302_s7 + $0x28] sm:$0xf] %vm562_vm1, %v759_v26  ;;  %v762_v30 = vpack.c.bf16 %v920_v27, %v920_v27 }
  0xf6   :  { %v924_v31 = vpop.eup %923  ;;  %576 = vst.msk [vmem:[%s1301_s6 + $0x34] sm:$0xf] %vm562_vm1, %v746_v28  ;;  %v745_v32 = vpack.c.bf16 %v922_v29, %v922_v29 }
  0xf7   :  { %v926_v33 = vpop.eup %925  ;;  %656 = vst.msk [vmem:[%s1302_s7 + $0x34] sm:$0xf] %vm562_vm1, %v762_v30  ;;  %v761_v34 = vpack.c.bf16 %v924_v31, %v924_v31 }
  0xf8   :  { %v928_v35 = vpop.eup %927  ;;  %575 = vst.msk [vmem:[%s1301_s6 + $0x30] sm:$0xf] %vm562_vm1, %v745_v32  ;;  %v748_v36 = vpack.c.bf16 %v926_v33, %v926_v33 }
  0xf9   :  { %v930_v37 = vpop.eup %929  ;;  %655 = vst.msk [vmem:[%s1302_s7 + $0x30] sm:$0xf] %vm562_vm1, %v761_v34  ;;  %v764_v38 = vpack.c.bf16 %v928_v35, %v928_v35 }
  0xfa   :  { %v932_v39 = vpop.eup %931  ;;  %578 = vst.msk [vmem:[%s1301_s6 + $0x3c] sm:$0xf] %vm562_vm1, %v748_v36  ;;  %v747_v42 = vpack.c.bf16 %v930_v37, %v930_v37 }
  0xfb   :  { %658 = vst.msk [vmem:[%s1302_s7 + $0x3c] sm:$0xf] %vm562_vm1, %v764_v38  ;;  %v763_v43 = vpack.c.bf16 %v932_v39, %v932_v39 }
  0xfc   :  { %577 = vst.msk [vmem:[%s1301_s6 + $0x38] sm:$0xf] %vm562_vm1, %v747_v42 }
  0xfd   :  { %657 = vst.msk [vmem:[%s1302_s7 + $0x38] sm:$0xf] %vm562_vm1, %v763_v43 }

</bundles_post_ra>
